<compile_context>
chip_gen: v7x
topology: tpu7x:2x2x1
jax: 0.10.0
libtpu: 0.0.40
codegen_flags: <defaults>
</compile_context>

<pallas_src>
import math

import jax
import jax.numpy as jnp
from jax import lax
from jax.experimental import pallas as pl
from jax.experimental.pallas import tpu as pltpu


def _attn_kernel(valid_lens_ref,        # SMEM scalar-prefetch, shape (B,), int32
                 q_ref, k_ref, v_ref,   # (1, H, L, D) VMEM tiles, bf16
                 mask_ref,              # (L, L) f32 additive mask (resident)
                 o_ref):                # (1, L, H*D) output tile, bf16
    b = pl.program_id(0)
    H, L, D = q_ref.shape[1], q_ref.shape[2], q_ref.shape[3]

    scale = 1.0 / math.sqrt(D)
    q = q_ref[0] * scale                 # bf16 (weak-typed scalar keeps bf16)
    k = k_ref[0]                         # (H, L, D) bf16
    v = v_ref[0]                         # (H, L, D) bf16

    # QK^T: bf16 x bf16 -> f32 accumulation, native MXU path.
    score = jnp.einsum("hqd,hkd->hqk", q, k,
                       preferred_element_type=jnp.float32)   # (H, L, L) f32

    # Combined additive mask, built ONCE per batch (shared across heads):
    #   user/causal mask  +  (row >= vl | col >= vl) * -1e9   (same as the module)
    vl = valid_lens_ref[b]
    row_ids = lax.broadcasted_iota(jnp.int32, (L, L), 0)
    col_ids = lax.broadcasted_iota(jnp.int32, (L, L), 1)
    invalid = (row_ids >= vl) | (col_ids >= vl)
    combined = mask_ref[...] + jnp.where(invalid, jnp.float32(-1e9),
                                         jnp.float32(0.0))   # (L, L) f32
    score = score + combined[None, :, :]

    # softmax over the key axis (f32); reciprocal on the otherwise-idle EUP slot.
    m = jnp.max(score, axis=-1, keepdims=True)
    e = jnp.exp(score - m)
    w = e * pl.reciprocal(jnp.sum(e, axis=-1, keepdims=True), approx=True)

    # (dropout with p=0 is identity)
    out = jnp.einsum("hqk,hkd->hqd", w.astype(v.dtype), v,
                     preferred_element_type=jnp.float32)     # (H, L, D) f32

    # permute(0,2,1,3).flatten(2): interleave heads along the lane axis and do
    # one full-width (lane-dense, H*D-wide) store. H is a static constant.
    o_flat = jnp.concatenate([out[h] for h in range(H)], axis=-1)  # (L, H*D)
    o_ref[0] = o_flat.astype(o_ref.dtype)


def dot_product_attention(q, k, v, mask, valid_lens):
    """q, k, v: [B, H, L, D] bf16; mask: [L, L] additive; valid_lens: [B] ints.

    Returns [B, L, H*D] (matches torch permute(0,2,1,3).flatten(2))."""
    B, H, L, D = q.shape
    mask_f32 = mask.astype(jnp.float32)          # cast once outside the kernel
    valid_lens = valid_lens.astype(jnp.int32)

    grid_spec = pltpu.PrefetchScalarGridSpec(
        num_scalar_prefetch=1,
        grid=(B,),
        in_specs=[
            pl.BlockSpec((1, H, L, D), lambda b, vl: (b, 0, 0, 0)),  # q
            pl.BlockSpec((1, H, L, D), lambda b, vl: (b, 0, 0, 0)),  # k
            pl.BlockSpec((1, H, L, D), lambda b, vl: (b, 0, 0, 0)),  # v
            pl.BlockSpec((L, L), lambda b, vl: (0, 0)),              # mask (resident)
        ],
        out_specs=pl.BlockSpec((1, L, H * D), lambda b, vl: (b, 0, 0)),
    )

    return pl.pallas_call(
        _attn_kernel,
        out_shape=jax.ShapeDtypeStruct((B, L, H * D), q.dtype),
        grid_spec=grid_spec,
        compiler_params=pltpu.CompilerParams(
            dimension_semantics=("parallel",)),   # batch axis shards across TCs (v7x)
    )(valid_lens, q, k, v, mask_f32)


def _reference(q, k, v, mask, valid_lens):
    B, H, L, D = q.shape
    qf, kf, vf = (x.astype(jnp.float32) for x in (q, k, v))
    score = jnp.einsum("bhqd,bhkd->bhqk", qf, kf) / math.sqrt(D)
    score = score + mask.astype(jnp.float32)[None, None]
    idxs = jnp.arange(L)[None, :]
    row_mask = idxs >= valid_lens[:, None]                        # (B, L)
    em = row_mask[:, None, :, None] | row_mask[:, None, None, :]  # (B,1,L,L)
    score = score + em.astype(jnp.float32) * -1e9
    w = jax.nn.softmax(score, axis=-1)
    out = jnp.einsum("bhqk,bhkd->bhqd", w, vf)
    return out.transpose(0, 2, 1, 3).reshape(B, L, H * D)


if __name__ == "__main__":
    B, H, L, D = 2, 4, 8, 32
    key = jax.random.PRNGKey(0)
    kq, kk, kv = jax.random.split(key, 3)
    q = jax.random.normal(kq, (B, H, L, D), dtype=jnp.float32).astype(jnp.bfloat16)
    k = jax.random.normal(kk, (B, H, L, D), dtype=jnp.float32).astype(jnp.bfloat16)
    v = jax.random.normal(kv, (B, H, L, D), dtype=jnp.float32).astype(jnp.bfloat16)

    # causal additive mask (0 allowed, -1e9 disallowed), stored in model dtype
    causal = jnp.where(jnp.tril(jnp.ones((L, L), dtype=bool)), 0.0, -1e9
                       ).astype(jnp.bfloat16)
    valid_lens = jnp.array([5, 8], dtype=jnp.int32)

    out = dot_product_attention(q, k, v, causal, valid_lens)
    jax.block_until_ready(out)

    ref = _reference(q, k, v, causal, valid_lens)
    assert out.shape == (B, L, H * D)
    err = jnp.max(jnp.abs(out.astype(jnp.float32) - ref))
    assert bool(err < 5e-2), f"max abs err too large: {err}"

    print("KERNEL_OK")
</pallas_src>

<mosaic_0001>
module attributes {stable_mosaic.version = 11 : i64} {
  func.func @_attn_kernel(%arg0: i32, %arg1: memref<2xi32, #tpu.memory_space<smem>>, %arg2: memref<1x4x8x32xbf16, #tpu.memory_space<vmem>>, %arg3: memref<1x4x8x32xbf16, #tpu.memory_space<vmem>>, %arg4: memref<1x4x8x32xbf16, #tpu.memory_space<vmem>>, %arg5: memref<8x8xf32, #tpu.memory_space<vmem>>, %arg6: memref<1x8x128xbf16, #tpu.memory_space<vmem>>) attributes {dimension_semantics = [#tpu.dimension_semantics<parallel>], iteration_bounds = array<i64: 2>, scalar_prefetch = 1 : i64, scratch_operands = 0 : i64, tpu.core_type = #tpu.core_type<tc>, window_params = [{transform_indices = @transform_0, window_bounds = array<i64: 1, 4, 8, 32>}, {transform_indices = @transform_1, window_bounds = array<i64: 1, 4, 8, 32>}, {transform_indices = @transform_2, window_bounds = array<i64: 1, 4, 8, 32>}, {pipeline_mode = #tpu.pipeline_mode<synchronous>, transform_indices = @transform_3, window_bounds = array<i64: 8, 8>}, {transform_indices = @transform_4, window_bounds = array<i64: 1, 8, 128>}]} {
    %c0 = arith.constant 0 : index
    %c0_0 = arith.constant 0 : index
    %c0_1 = arith.constant 0 : index
    %c0_2 = arith.constant 0 : index
    %0 = vector.load %arg2[%c0, %c0_0, %c0_1, %c0_2] : memref<1x4x8x32xbf16, #tpu.memory_space<vmem>>, vector<1x4x8x32xbf16>
    %1 = vector.shape_cast %0 : vector<1x4x8x32xbf16> to vector<4x8x32xbf16>
    %cst = arith.constant 1.767580e-01 : bf16
    %2 = vector.broadcast %cst : bf16 to vector<4x8x32xbf16>
    %3 = arith.mulf %1, %2 : vector<4x8x32xbf16>
    %c0_3 = arith.constant 0 : index
    %c0_4 = arith.constant 0 : index
    %c0_5 = arith.constant 0 : index
    %c0_6 = arith.constant 0 : index
    %4 = vector.load %arg3[%c0_3, %c0_4, %c0_5, %c0_6] : memref<1x4x8x32xbf16, #tpu.memory_space<vmem>>, vector<1x4x8x32xbf16>
    %5 = vector.shape_cast %4 : vector<1x4x8x32xbf16> to vector<4x8x32xbf16>
    %c0_7 = arith.constant 0 : index
    %c0_8 = arith.constant 0 : index
    %c0_9 = arith.constant 0 : index
    %c0_10 = arith.constant 0 : index
    %6 = vector.load %arg4[%c0_7, %c0_8, %c0_9, %c0_10] : memref<1x4x8x32xbf16, #tpu.memory_space<vmem>>, vector<1x4x8x32xbf16>
    %7 = vector.shape_cast %6 : vector<1x4x8x32xbf16> to vector<4x8x32xbf16>
    "tpu.trace_start"() <{level = 10 : i32, message = "hqd,hkd->hqk"}> : () -> ()
    %cst_11 = arith.constant dense<0.000000e+00> : vector<4x8x8xf32>
    %8 = tpu.matmul %3, %5, %cst_11 {dimension_numbers = #tpu.dot_dimension_numbers<[2], [2], [1], [1], [0, 0, 0, 1, 1, 1], [0], [0]>} : vector<4x8x32xbf16>, vector<4x8x32xbf16>, vector<4x8x8xf32> -> vector<4x8x8xf32>
    "tpu.trace_stop"() : () -> ()
    %9 = arith.index_cast %arg0 : i32 to index
    %10 = memref.load %arg1[%9] : memref<2xi32, #tpu.memory_space<smem>>
    %11 = tpu.iota {dimensions = array<i32: 0>} : vector<8x8xi32>
    %12 = tpu.iota {dimensions = array<i32: 1>} : vector<8x8xi32>
    %13 = vector.broadcast %10 : i32 to vector<8x8xi32>
    %14 = arith.cmpi sge, %11, %13 : vector<8x8xi32>
    %15 = vector.broadcast %10 : i32 to vector<8x8xi32>
    %16 = arith.cmpi sge, %12, %15 : vector<8x8xi32>
    %17 = arith.ori %14, %16 : vector<8x8xi1>
    %c0_12 = arith.constant 0 : index
    %c0_13 = arith.constant 0 : index
    %18 = vector.load %arg5[%c0_12, %c0_13] : memref<8x8xf32, #tpu.memory_space<vmem>>, vector<8x8xf32>
    %cst_14 = arith.constant -1.000000e+09 : f32
    %cst_15 = arith.constant 0.000000e+00 : f32
    %19 = vector.broadcast %cst_14 : f32 to vector<8x8xf32>
    %20 = vector.broadcast %cst_15 : f32 to vector<8x8xf32>
    %21 = arith.select %17, %19, %20 : vector<8x8xi1>, vector<8x8xf32>
    %22 = arith.addf %18, %21 : vector<8x8xf32>
    %23 = vector.shape_cast %22 : vector<8x8xf32> to vector<1x8x8xf32>
    %24 = vector.broadcast %23 : vector<1x8x8xf32> to vector<4x8x8xf32>
    %25 = arith.addf %8, %24 : vector<4x8x8xf32>
    %cst_16 = arith.constant dense<0xFF800000> : vector<4x8xf32>
    %26 = vector.multi_reduction <maximumf>, %25, %cst_16 [2] : vector<4x8x8xf32> to vector<4x8xf32>
    %27 = vector.shape_cast %26 : vector<4x8xf32> to vector<4x8x1xf32>
    %28 = vector.broadcast %27 : vector<4x8x1xf32> to vector<4x8x8xf32>
    %29 = arith.subf %25, %28 : vector<4x8x8xf32>
    %30 = math.exp %29 : vector<4x8x8xf32>
    %cst_17 = arith.constant dense<0.000000e+00> : vector<4x8xf32>
    %31 = vector.multi_reduction <add>, %30, %cst_17 [2] : vector<4x8x8xf32> to vector<4x8xf32>
    %32 = vector.shape_cast %31 : vector<4x8xf32> to vector<4x8x1xf32>
    %33 = tpu.reciprocal %32 {approx = true} : vector<4x8x1xf32> -> vector<4x8x1xf32>
    %34 = vector.broadcast %33 : vector<4x8x1xf32> to vector<4x8x8xf32>
    %35 = arith.mulf %30, %34 : vector<4x8x8xf32>
    %36 = arith.truncf %35 : vector<4x8x8xf32> to vector<4x8x8xbf16>
    "tpu.trace_start"() <{level = 10 : i32, message = "hqk,hkd->hqd"}> : () -> ()
    %cst_18 = arith.constant dense<0.000000e+00> : vector<4x8x32xf32>
    %37 = tpu.matmul %36, %7, %cst_18 {dimension_numbers = #tpu.dot_dimension_numbers<[2], [1], [1], [2], [0, 0, 0, 1, 1, 2], [0], [0]>} : vector<4x8x8xbf16>, vector<4x8x32xbf16>, vector<4x8x32xf32> -> vector<4x8x32xf32>
    "tpu.trace_stop"() : () -> ()
    %38 = vector.extract_strided_slice %37 {offsets = [0, 0, 0], sizes = [1, 8, 32], strides = [1, 1, 1]} : vector<4x8x32xf32> to vector<1x8x32xf32>
    %39 = vector.shape_cast %38 : vector<1x8x32xf32> to vector<8x32xf32>
    %40 = vector.extract_strided_slice %37 {offsets = [1, 0, 0], sizes = [1, 8, 32], strides = [1, 1, 1]} : vector<4x8x32xf32> to vector<1x8x32xf32>
    %41 = vector.shape_cast %40 : vector<1x8x32xf32> to vector<8x32xf32>
    %42 = vector.extract_strided_slice %37 {offsets = [2, 0, 0], sizes = [1, 8, 32], strides = [1, 1, 1]} : vector<4x8x32xf32> to vector<1x8x32xf32>
    %43 = vector.shape_cast %42 : vector<1x8x32xf32> to vector<8x32xf32>
    %44 = vector.extract_strided_slice %37 {offsets = [3, 0, 0], sizes = [1, 8, 32], strides = [1, 1, 1]} : vector<4x8x32xf32> to vector<1x8x32xf32>
    %45 = vector.shape_cast %44 : vector<1x8x32xf32> to vector<8x32xf32>
    %46 = tpu.concatenate %39, %41, %43, %45 in 1 : vector<8x32xf32>, vector<8x32xf32>, vector<8x32xf32>, vector<8x32xf32> -> vector<8x128xf32>
    %47 = arith.truncf %46 : vector<8x128xf32> to vector<8x128xbf16>
    %c0_19 = arith.constant 0 : index
    %c0_20 = arith.constant 0 : index
    %c0_21 = arith.constant 0 : index
    %48 = vector.load %arg6[%c0_19, %c0_20, %c0_21] : memref<1x8x128xbf16, #tpu.memory_space<vmem>>, vector<1x8x128xbf16>
    %49 = vector.shape_cast %48 : vector<1x8x128xbf16> to vector<8x128xbf16>
    %50 = vector.shape_cast %47 : vector<8x128xbf16> to vector<1x8x128xbf16>
    tpu.vector_store %arg6[%c0_19, %c0_20, %c0_21], %50 {strides = array<i32>} : memref<1x8x128xbf16, #tpu.memory_space<vmem>>, vector<1x8x128xbf16>,
    return
  }
  func.func @transform_0(%arg0: i32, %arg1: memref<2xi32, #tpu.memory_space<smem>>) -> (i32, i32, i32, i32) {
    %c0_i32 = arith.constant 0 : i32
    %c0_i32_0 = arith.constant 0 : i32
    %c0_i32_1 = arith.constant 0 : i32
    %c0_i32_2 = arith.constant 0 : i32
    return %arg0, %c0_i32, %c0_i32_0, %c0_i32_1 : i32, i32, i32, i32
  }
  func.func @transform_1(%arg0: i32, %arg1: memref<2xi32, #tpu.memory_space<smem>>) -> (i32, i32, i32, i32) {
    %c0_i32 = arith.constant 0 : i32
    %c0_i32_0 = arith.constant 0 : i32
    %c0_i32_1 = arith.constant 0 : i32
    %c0_i32_2 = arith.constant 0 : i32
    return %arg0, %c0_i32, %c0_i32_0, %c0_i32_1 : i32, i32, i32, i32
  }
  func.func @transform_2(%arg0: i32, %arg1: memref<2xi32, #tpu.memory_space<smem>>) -> (i32, i32, i32, i32) {
    %c0_i32 = arith.constant 0 : i32
    %c0_i32_0 = arith.constant 0 : i32
    %c0_i32_1 = arith.constant 0 : i32
    %c0_i32_2 = arith.constant 0 : i32
    return %arg0, %c0_i32, %c0_i32_0, %c0_i32_1 : i32, i32, i32, i32
  }
  func.func @transform_3(%arg0: i32, %arg1: memref<2xi32, #tpu.memory_space<smem>>) -> (i32, i32) {
    %c0_i32 = arith.constant 0 : i32
    %c0_i32_0 = arith.constant 0 : i32
    %c0_i32_1 = arith.constant 0 : i32
    return %c0_i32, %c0_i32_0 : i32, i32
  }
  func.func @transform_4(%arg0: i32, %arg1: memref<2xi32, #tpu.memory_space<smem>>) -> (i32, i32, i32) {
    %c0_i32 = arith.constant 0 : i32
    %c0_i32_0 = arith.constant 0 : i32
    %c0_i32_1 = arith.constant 0 : i32
    return %arg0, %c0_i32, %c0_i32_0 : i32, i32, i32
  }
}

</mosaic_0001>

<bundles_post_ra>
// kernel: tpu_custom_call.1
= control target key start
LH: loop header
LB: loop body
LE: loop exit
PB: predicated region body
PF: predicated region fallthrough
CT: control target
= control target key end

     0   :  { %s1612_s0 = inlined_call_operand.hbm [shape: s32[2], index: 0, kind: input, shape index: {}]   ;;  %s1613_s1 = inlined_call_operand.hbm [shape: bf16[2,4,8,32], index: 1, kind: input, shape index: {}]   ;;  %s1614_s2 = inlined_call_operand.hbm [shape: bf16[2,4,8,32], index: 2, kind: input, shape index: {}]   ;;  %s1615_s3 = inlined_call_operand.hbm [shape: bf16[2,4,8,32], index: 3, kind: input, shape index: {}]   ;;  %s1616_s4 = inlined_call_operand.vmem [shape: f32[8,8], index: 4, kind: input, shape index: {}]   ;;  %s1617_s5 = inlined_call_operand.hbm [shape: bf16[2,8,128], index: 5, kind: output, shape index: {}]  }
   0x1   :  { %1624 = sst [smem:[#allocation15_spill]] %s1613_s1  ;;  %s1069_s20 = scalar_lea.hbm %s1612_s0, 16 }
   0x2   :  { %1625 = sst [smem:[#allocation16_spill]] %s1614_s2  ;;  %p1070_p0 = scmp.ne.s32.totalorder %s1612_s0, %s1069_s20 }
   0x3   :  { %p1073_p1 = scmp.lt.u32.totalorder %s1069_s20, %s1612_s0 }
   0x5   :  { %p1075_p2 = pnand %p1073_p1, %p1070_p0 }
   0x7   :  { %1078 = shalt.err (!%p1075_p2)  }
   0x8   :  { %s1243_s25 = smov [#allocation3]  }
   0x9   :  { %11 = dma.hbm_to_smem %s1612_s0, 16, %s1243_s25, [#allocation2] }
   0xa   :  { %1213 = dma.done.wait [#allocation2], 16 }
   0xb   :  { %1214 = vsyncadd [#allocation2], 4294967280 }
   0xc   :  { %13 = sfence }
   0xd   :  { %14 = vsyncpa [#allocation5], 0 }
   0xe   :  { %16 = vsyncpa [#allocation5 + $0x1], 0 }
   0xf   :  { %17 = vsyncpa [#allocation8], 0 }
  0x10   :  { %19 = vsyncpa [#allocation8 + $0x1], 0 }
  0x11   :  { %20 = vsyncpa [#allocation6], 0 }
  0x12   :  { %22 = vsyncpa [#allocation6 + $0x1], 0  ;;  %s1297_s28 = smov 0   ;;  %s1299_s29 = smov 0  }
  0x13   :  { %s1301_s30 = smov 0   ;;  %s1303_s6 = smov 0  }
  0x14 LB: > { %s1318_s0 = sadd.s32 4294967295, %s1241_s6   ;;  %s893_s7 = sadd.s32 4294967294, %s1241_s6   ;;  %s1241_s6 = sphi %s1303_s6, %s1645_s6   ;;  %s1237_s30 = sphi %s1301_s30, %s1644_s30   ;;  %s1233_s29 = sphi %s1299_s29, %s1643_s29   ;;  %s1229_s28 = sphi %s1297_s28, %s1642_s28  }
  0x15   : > { %s1322_s8 = sadd.s32 1, %s1241_s6   ;;  %s35_s9 = sadd.s32 1, %s1237_s30 }
  0x16   : > { %s32_s10 = ssub.s32 %s1241_s6, %s1322_s8  ;;  %p42_p3 = scmp.ne.s32.totalorder %s1237_s30, %s1233_s29 }
  0x17   : > { %p33_p4 = scmp.eq.s32.totalorder %s32_s10, 0  ;;  %p43_p5 = scmp.eq.s32.totalorder %s1241_s6, 0 }
  0x18   : > { %p48_p6 = scmp.ne.s32.totalorder %s1233_s29, %s1229_s28  ;;  %p49_p7 = scmp.eq.s32.totalorder %s1318_s0, 0 }
  0x19   : > { %s1334_s11 = scalar_select %p33_p4, %s1237_s30, %s35_s9  }
  0x1a   : > { %p44_p8 = por %p43_p5, %p42_p3  ;;  %p1336_p9 = por %p49_p7, %p48_p6 }
  0x1b   : > { %p145_p10 = scmp.eq.s32.totalorder %s1318_s0, 1  ;;  %p151_p11 = scmp.eq.s32.totalorder %s893_s7, 1 }
  0x1c   : > { %s1626_s12 = scalar_select %p1336_p9, 1, 0 }
  0x1d   : > { %p1011_p13 = scmp.lt.s32.totalorder %s1241_s6, 2  ;;  %p1343_p0 = por %p145_p10, %p42_p3 }
  0x1e   : > { %p1347_p1 = por %p151_p11, %p48_p6  ;;  %s174_s15 = sand.u32 1, %s1237_s30  }
  0x1f   : > { %s1627_s13 = scalar_select %p1343_p0, 1, 0 }
  0x20   : > { %s1628_s14 = scalar_select %p1347_p1, 1, 0 }
  0x21   : > { %s1353_s16 = sshll.u32 %s1241_s6, 8  ;;  %s1357_s17 = sshll.u32 %s174_s15, 4 }
  0x22   : > { %p1359_p2 = pnand %p1011_p13, %p44_p8  ;;  %s195_s19 = sand.u32 1, %s1241_s6  }
  0x23   : > { %s1630_s2 = sld [smem:[#allocation16_spill]]  ;;  %s199_s23 = scalar_lea.vmem [#allocation7], %s1357_s17 }
  0x24   : > { %s206_s24 = sshll.u32 %s199_s23, 4  ;;  %s1374_s25 = scalar_lea.sflag [#allocation8], %s195_s19  ;;  %s1371_s24 = int_to_ptr.vmem [resolvable:$true] %s206_s24 }
  0x25   : > { %p1380_p5 = pneg %p1359_p2 }
  0x29   : > { %s1368_s22 = scalar_lea.hbm %s1630_s2, %s1353_s16  ;;  %s1084_s10 = scalar_lea.hbm %s1630_s2, 512 }
  0x2a   : > { %s1079_s26 = scalar_lea.hbm %s1368_s22, 256  ;;  %p1085_p8 = scmp.lt.u32.totalorder %s1368_s22, %s1630_s2 }
  0x2b   : > { %p1080_p4 = scmp.ne.s32.totalorder %s1368_s22, %s1079_s26  ;;  %p1086_p10 = scmp.lt.u32.totalorder %s1084_s10, %s1079_s26 }
  0x2c   : > { %p1088_p13 = scmp.lt.u32.totalorder %s1079_s26, %s1368_s22 }
  0x2d   : > { %p1082_p6 = pnand %p1380_p5, %p1080_p4  ;;  %p1087_p11 = por %p1086_p10, %p1085_p8 }
  0x2f   : > { %p1083_p7 = pneg %p1082_p6  ;;  %p1089_p12 = por %p1088_p13, %p1087_p11 }
  0x31   : > { %p1090_p3 = pnand %p1089_p12, %p1083_p7 }
  0x33   : > { %1093 = shalt.err (!%p1090_p3)
}
  0x34   : > { %s1094_s19 = scalar_lea.vmem %s1371_s24, 256  ;;  %s1244_s23 = smov [#allocation7]  }
  0x35   : > { %p1095_p4 = scmp.ne.s32.totalorder %s1371_s24, %s1094_s19  ;;  %s1099_s7 = sshll.u32 %s1244_s23, 4  ;;  %s1100_s7 = int_to_ptr.vmem [resolvable:$false] %s1099_s7 }
  0x36   : > { %s1101_s9 = scalar_lea.vmem %s1100_s7, 512  ;;  %p1102_p0 = scmp.lt.s32.totalorder %s1371_s24, %s1100_s7 }
  0x37   : > { %p1097_p6 = pnand %p1095_p4, %p1380_p5  ;;  %p1103_p9 = scmp.lt.s32.totalorder %s1101_s9, %s1094_s19 }
  0x39   : > { %p1098_p1 = pneg %p1097_p6  ;;  %p1104_p8 = por %p1103_p9, %p1102_p0 }
  0x3b   : > { %p1105_p10 = pnand %p1104_p8, %p1098_p1 }
  0x3d   : > { %1108 = shalt.err (!%p1105_p10)
}
  0x3e   : > { %s1620_s26 = smov 64   ;;  %s1622_s10 = smov 4  }
  0x3f   : > { %1003 = dma.hbm_to_vmem [thread:$0]  (!%p1359_p2), %s1368_s22, 256, %s1371_s24, %s1374_s25, %s1620_s26, %s1620_s26, %s1622_s10  }
  0x40   : > { %p235_p9 = scmp.lt.s32.totalorder %s1241_s6, 3  ;;  %s1632_s1 = sld [smem:[#allocation15_spill]] }
  0x41   : > { %p1633_p12 = scmp.ge.s32.totalorder %s1241_s6, 1  ;;  %s178_s7 = scalar_lea.vmem [#allocation4], %s1357_s17 }
  0x42   : > { %s185_s9 = sshll.u32 %s178_s7, 4  ;;  %s1425_s22 = scalar_lea.sflag [#allocation5], %s174_s15  ;;  %s1421_s9 = int_to_ptr.vmem [resolvable:$true] %s185_s9 }
  0x43   : > { %p1416_p0 = pnand %p1633_p12, %p235_p9 }
  0x45   : > { %s1634_s23 = scalar_select %p1416_p0, 1, 0 }
  0x46   : > { %s1412_s19 = scalar_lea.hbm %s1632_s1, %s1353_s16  ;;  %s1114_s26 = scalar_lea.hbm %s1632_s1, 512 }
  0x47   : > { %s1109_s24 = scalar_lea.hbm %s1412_s19, 256  ;;  %p1115_p11 = scmp.lt.u32.totalorder %s1412_s19, %s1632_s1 }
  0x48   : > { %p1110_p1 = scmp.ne.s32.totalorder %s1412_s19, %s1109_s24  ;;  %p1116_p13 = scmp.lt.u32.totalorder %s1114_s26, %s1109_s24 }
  0x49   : > { %p1118_p6 = scmp.lt.u32.totalorder %s1109_s24, %s1412_s19 }
  0x4a   : > { %p1112_p3 = pnand %p1110_p1, %p1380_p5  ;;  %p1117_p4 = por %p1116_p13, %p1115_p11 }
  0x4c   : > { %p1113_p7 = pneg %p1112_p3  ;;  %p1119_p8 = por %p1118_p6, %p1117_p4 }
  0x4e   : > { %p1120_p10 = pnand %p1119_p8, %p1113_p7 }
  0x50   : > { %1123 = shalt.err (!%p1120_p10)
}
  0x51   : > { %s1124_s15 = scalar_lea.vmem %s1421_s9, 256  ;;  %s1247_s7 = smov [#allocation4]  }
  0x52   : > { %p1125_p9 = scmp.ne.s32.totalorder %s1421_s9, %s1124_s15  ;;  %s1129_s20 = sshll.u32 %s1247_s7, 4  ;;  %s1130_s20 = int_to_ptr.vmem [resolvable:$false] %s1129_s20 }
  0x53   : > { %s1131_s2 = scalar_lea.vmem %s1130_s20, 512  ;;  %p1132_p3 = scmp.lt.s32.totalorder %s1421_s9, %s1130_s20 }
  0x54   : > { %p1127_p12 = pnand %p1125_p9, %p1380_p5  ;;  %p1133_p0 = scmp.lt.s32.totalorder %s1131_s2, %s1124_s15 }
  0x56   : > { %p1128_p1 = pneg %p1127_p12  ;;  %p1134_p11 = por %p1133_p0, %p1132_p3 }
  0x58   : > { %p1135_p13 = pnand %p1134_p11, %p1128_p1 }
  0x5a   : > { %1138 = shalt.err (!%p1135_p13)
}
  0x5b   : > { %s1635_s26 = smov 4   ;;  %s1636_s10 = smov 64  }
  0x5c   : > { %1000 = dma.hbm_to_vmem [thread:$0]  (!%p1359_p2), %s1412_s19, 256, %s1421_s9, %s1425_s22, %s1636_s10, %s1636_s10, %s1635_s26  }
  0x5d   : > { %s1456_s7 = scalar_lea.hbm %s1615_s3, %s1353_s16  ;;  %s220_s15 = scalar_lea.vmem [#allocation9], %s1357_s17 }
  0x5e   : > { %s227_s20 = sshll.u32 %s220_s15, 4  ;;  %s1139_s2 = scalar_lea.hbm %s1456_s7, 256  ;;  %s1459_s20 = int_to_ptr.vmem [resolvable:$true] %s227_s20 }
  0x5f   : > { %p1140_p0 = scmp.ne.s32.totalorder %s1456_s7, %s1139_s2  ;;  %s1144_s9 = scalar_lea.hbm %s1615_s3, 512 }
  0x60   : > { %p1145_p6 = scmp.lt.u32.totalorder %s1456_s7, %s1615_s3  ;;  %p1146_p8 = scmp.lt.u32.totalorder %s1144_s9, %s1139_s2 }
  0x61   : > { %p1142_p7 = pnand %p1140_p0, %p1380_p5  ;;  %p1148_p9 = scmp.lt.u32.totalorder %s1139_s2, %s1456_s7 }
  0x62   : > { %p1147_p10 = por %p1146_p8, %p1145_p6 }
  0x63   : > { %p1143_p4 = pneg %p1142_p7 }
  0x64   : > { %p1149_p12 = por %p1148_p9, %p1147_p10 }
  0x66   : > { %p1150_p1 = pnand %p1149_p12, %p1143_p4 }
  0x68   : > { %1153 = shalt.err (!%p1150_p1)
}
  0x69   : > { %s1154_s17 = scalar_lea.vmem %s1459_s20, 256  ;;  %s1248_s1 = smov [#allocation9]  }
  0x6a   : > { %p1155_p3 = scmp.ne.s32.totalorder %s1459_s20, %s1154_s17  ;;  %s1159_s24 = sshll.u32 %s1248_s1, 4  ;;  %s1160_s24 = int_to_ptr.vmem [resolvable:$false] %s1159_s24 }
  0x6b   : > { %s1161_s21 = scalar_lea.vmem %s1160_s24, 512  ;;  %p1162_p0 = scmp.lt.s32.totalorder %s1459_s20, %s1160_s24 }
  0x6c   : > { %p1157_p11 = pnand %p1155_p3, %p1380_p5  ;;  %p1163_p7 = scmp.lt.s32.totalorder %s1161_s21, %s1154_s17 }
  0x6e   : > { %p1158_p13 = pneg %p1157_p11  ;;  %p1164_p6 = por %p1163_p7, %p1162_p0 }
  0x70   : > { %p1165_p8 = pnand %p1164_p6, %p1158_p13 }
  0x72   : > { %1168 = shalt.err (!%p1165_p8)
}
  0x73   : > { %1006 = dma.hbm_to_vmem [thread:$0]  (!%p1359_p2), %s1456_s7, 256, %s1459_s20, %s1374_s25, %s1636_s10, %s1636_s10, %s1635_s26  }
  0x74   : > { %p1637_p5 = scmp.ne.s32.totalorder %s1634_s23, 0 }
  0x75   : > { %s1489_s27 = sand.u32 (!%p1637_p5), 1, %s1233_s29   ;;  %p1638_p4 = scmp.ne.s32.totalorder (!%p1637_p5), %s1626_s12, 0 }
  0x76   : > { %239 = sbr.rel (%p1637_p5) target bundleno = 1025 (0x401), region = 36  ;;  %s1492_s15 = sshll.u32 (!%p1637_p5), %s1489_s27, 4 }
  0x77   : > { %s242_s18 = scalar_lea.sflag (!%p1637_p5), [#allocation5], %s1489_s27  ;;  %s1496_s2 = scalar_lea.vmem (!%p1637_p5), [#allocation4], %s1492_s15 }
  0x7d   : > { %1216 = dma.done.wait (%p1638_p4), %s242_s18, 256  }
  0x7e   : > { %1218 = vsyncadd (%p1638_p4), %s242_s18, 4294967040  ;;  %s250_s25 = sand.u32 1, %s1318_s0   ;;  %s254_s26 = scalar_lea.vmem [#allocation7], %s1492_s15 }
  0x7f   : > { %s251_s23 = scalar_lea.sflag [#allocation8], %s250_s25 }
  0x80   : > { %1220 = dma.done.wait (%p1638_p4), %s251_s23, 512  }
  0x81   : > { %1222 = vsyncadd (%p1638_p4), %s251_s23, 4294966784  ;;  %v1249_v0 = vmov 0.0   ;;  %vm1250_vm0 = vmmov 0   ;;  %vm328_vm1 = vcmask 261120   ;;  %v308_v1 = vld [vmem:[%s254_s26] sm:$0xf]  ;;  %v317_v17 = vlaneseq }
  0x82   : > { %941 = vmatprep.subr.bf16.mxu0 %v1249_v0  ;;  %947 = vmatprep.subr.bf16.mxu1 %v1249_v0  ;;  %v309_v2 = vld [vmem:[%s254_s26 + $0x4] sm:$0xf]  ;;  %v333_v3 = vsel %vm328_vm1, %v308_v1, 0  ;;  %v300_v5 = vld [vmem:[%s1496_s2] sm:$0xf]  ;;  %s316_s12 = sld [smem:[#allocation3 + %s1318_s0]] }
  0x83   : > { %943 = vmatprep.mubr.msk.bf16.mxu0 %vm1250_vm0, %v1249_v0  ;;  %949 = vmatprep.mubr.msk.bf16.mxu1 %vm1250_vm0, %v1249_v0  ;;  %v379_v4 = vsel %vm328_vm1, %v309_v2, 0  ;;  %v301_v6 = vld [vmem:[%s1496_s2 + $0x4] sm:$0xf]  ;;  %v310_v7 = vld [vmem:[%s254_s26 + $0x8] sm:$0xf]  ;;  %v318_v18 = vshrl.u32 %v317_v17, 7 }
  0x84   : > { %942 = vmatpush3.bf16.xpose.msra.mxu0 %v333_v3  ;;  %948 = vmatpush3.bf16.xpose.msra.mxu1 %v379_v4  ;;  %v311_v8 = vld [vmem:[%s254_s26 + $0xc] sm:$0xf]  ;;  %v304_v9 = vmul.bf16 1043676725, %v300_v5  ;;  %v305_v10 = vmul.bf16 1043676725, %v301_v6 }
  0x85   : > { %953 = vmatprep.subr.bf16.mxu0 %v1249_v0  ;;  %959 = vmatprep.subr.bf16.mxu1 %v1249_v0  ;;  %v425_v11 = vsel %vm328_vm1, %v310_v7, 0  ;;  %v471_v12 = vsel %vm328_vm1, %v311_v8, 0  ;;  %v302_v13 = vld [vmem:[%s1496_s2 + $0x8] sm:$0xf]  ;;  %v303_v14 = vld [vmem:[%s1496_s2 + $0xc] sm:$0xf] }
  0x86   : > { %v306_v15 = vmul.bf16 1043676725, %v302_v13  ;;  %v307_v16 = vmul.bf16 1043676725, %v303_v14  ;;  %v320_v19 = vand.u32 127, %v317_v17  ;;  %v325_v21 = vld [vmem:[%s1616_s4] sm:$0xff] }
  0x87   : > { %vm513_vm5 = vcmask 64512   ;;  %s263_s20 = scalar_lea.vmem [#allocation9], %s1492_s15  ;;  %vm565_vm6 = vcmask 1043456   ;;  %s1251_s19 = smov 32   ;;  %vm760_vm7 = vcmask 523264   ;;  %vm762_vm8 = vcmask 785408  }
  0x88   : > { %v321_v20 = vstv %s316_s12  ;;  %v312_v5 = vld [vmem:[%s263_s20] sm:$0xf]  ;;  %v313_v7 = vld [vmem:[%s263_s20 + $0x4] sm:$0xf]  ;;  %s1252_s9 = smov 64   ;;  %s1253_s22 = smov 96  }
  0x89   : > { %vm322_vm2 = vcmp.ge.s32.totalorder %v318_v18, %v321_v20  ;;  %vm323_vm3 = vcmp.ge.s32.totalorder %v320_v19, %v321_v20  ;;  %v567_v6 = vsel %vm565_vm6, %v312_v5, 0  ;;  %v613_v8 = vsel %vm565_vm6, %v313_v7, 0  ;;  %s909_s16 = sshll.u32 %s1489_s27, 2  ;;  %s919_s17 = sshll.u32 %s1318_s0, 6 }
  0x8a   : > { %vm324_vm4 = vmor %vm322_vm2, %vm323_vm3  ;;  %s297_s1 = scalar_lea.vmem [#allocation10], %s909_s16  ;;  %s1568_s18 = scalar_lea.hbm %s1617_s5, %s919_s17 }
  0x8b   : > { %944 = vmatmul.mubr.msk.bf16.vlgmr.msra.gmra.mrb[0].mxu0 %vm328_vm1, %v304_v9  ;;  %950 = vmatmul.mubr.msk.bf16.vlgmr.msra.gmra.mrb[0].mxu1 %vm328_vm1, %v305_v10  ;;  %v326_v22 = vsel %vm324_vm4, -1e+09, %v1249_v0  ;;  %v314_v9 = vld [vmem:[%s263_s20 + $0x8] sm:$0xf]  ;;  %s780_s24 = sshll.u32 %s297_s1, 4  ;;  %s767_s2 = scalar_lea.sflag [#allocation6], %s1489_s27  ;;  %s1570_s24 = int_to_ptr.vmem [resolvable:$true] %s780_s24 }
  0x8c   : > { %954 = vmatpush3.bf16.xpose.msra.mxu0 %v425_v11  ;;  %960 = vmatpush3.bf16.xpose.msra.mxu1 %v471_v12  ;;  %v327_v23 = vadd.f32 %v326_v22, %v325_v21  ;;  %v659_v10 = vsel %vm565_vm6, %v314_v9, 0  ;;  %v315_v11 = vld [vmem:[%s263_s20 + $0xc] sm:$0xf]  ;;  %s1169_s25 = scalar_lea.vmem %s1570_s24, 64  ;;  %p1639_p10 = scmp.ne.s32.totalorder %s1627_s13, 0 }
  0x8d   : > { %955 = vmatprep.mubr.msk.bf16.mxu0 %vm1250_vm0, %v1249_v0  ;;  %961 = vmatprep.mubr.msk.bf16.mxu1 %vm1250_vm0, %v1249_v0  ;;  %v705_v12 = vsel %vm565_vm6, %v315_v11, 0  ;;  %p1170_p2 = scmp.ne.s32.totalorder %s1570_s24, %s1169_s25  ;;  %s1254_s0 = smov [#allocation10]  }
  0x8e   : > { %965 = vmatprep.subr.bf16.mxu0 %v1249_v0  ;;  %971 = vmatprep.subr.bf16.mxu1 %v1249_v0  ;;  %s1173_s23 = sshll.u32 %s1254_s0, 4  ;;  %s1174_s23 = int_to_ptr.vmem [resolvable:$false] %s1173_s23 }
  0x8f   : > { %p1171_p9 = pnand %p1170_p2, %p1639_p10  ;;  %s1175_s26 = scalar_lea.vmem %s1174_s23, 128 }
  0x90   : > { %p1176_p1 = scmp.lt.s32.totalorder %s1570_s24, %s1174_s23  ;;  %p1177_p3 = scmp.lt.s32.totalorder %s1175_s26, %s1169_s25 }
  0x91   : > { %p1172_p12 = pneg %p1171_p9 }
  0x92   : > { %p1178_p11 = por %p1177_p3, %p1176_p1 }
  0x93   : > { %956 = vmatmul.mubr.msk.bf16.vlgmr.msra.gmra.mrb[4].mxu0 %vm328_vm1, %v306_v15  ;;  %962 = vmatmul.mubr.msk.bf16.vlgmr.msra.gmra.mrb[4].mxu1 %vm328_vm1, %v307_v16 }
  0x94   : > { %967 = vmatprep.mubr.msk.bf16.mxu0 %vm1250_vm0, %v1249_v0  ;;  %973 = vmatprep.mubr.msk.bf16.mxu1 %vm1250_vm0, %v1249_v0  ;;  %p1179_p13 = pnand %p1178_p11, %p1172_p12 }
  0x95   : > { %966 = vmatpush3.bf16.msra.mxu0 %v567_v6  ;;  %972 = vmatpush3.bf16.msra.mxu1 %v613_v8 }
  0x96   : > { %977 = vmatprep.subr.bf16.mxu0 %v1249_v0  ;;  %983 = vmatprep.subr.bf16.mxu1 %v1249_v0 }
 0x15e   : > { %v369_v24 = vpop.f32.mrb[0].mxu0  ;;  %v415_v25 = vpop.f32.mrb[0].mxu1 }
 0x15f   : > { %v370_v26 = vadd.f32 %v369_v24, %v327_v23  ;;  %v945_v27 = vpop.f32.mrb[1].mxu0  ;;  %v416_v28 = vadd.f32 %v415_v25, %v327_v23  ;;  %v951_v29 = vpop.f32.mrb[1].mxu1 }
 0x160   : > { %v372_v30 = vpop.f32.mrb[2].mxu0  ;;  %v418_v31 = vpop.f32.mrb[2].mxu1 }
 0x161   : > { %v946_v32 = vpop.f32.mrb[3].mxu0  ;;  %v514_v33 = vsel %vm513_vm5, %v370_v26, -inf  ;;  %v952_v34 = vpop.f32.mrb[3].mxu1  ;;  %v517_v35 = vsel %vm513_vm5, %v416_v28, -inf }
 0x162   : > { %515 = vmax.xlane.f32.xlu0 %v514_v33 }
 0x166   : > { %518 = vmax.xlane.f32.xlu0 %v517_v35  ;;  %v461_v36 = vpop.f32.mrb[4].mxu0  ;;  %v507_v37 = vpop.f32.mrb[4].mxu1 }
 0x167   : > { %v462_v38 = vadd.f32 %v461_v36, %v327_v23  ;;  %v957_v39 = vpop.f32.mrb[5].mxu0  ;;  %v508_v40 = vadd.f32 %v507_v37, %v327_v23  ;;  %v963_v41 = vpop.f32.mrb[5].mxu1 }
 0x168   : > { %v464_v42 = vpop.f32.mrb[6].mxu0  ;;  %v510_v43 = vpop.f32.mrb[6].mxu1 }
 0x169   : > { %v958_v44 = vpop.f32.mrb[7].mxu0  ;;  %v520_v45 = vsel %vm513_vm5, %v462_v38, -inf  ;;  %v964_v46 = vpop.f32.mrb[7].mxu1  ;;  %v523_v47 = vsel %vm513_vm5, %v508_v40, -inf }
 0x16a   : > { %521 = vmax.xlane.f32.xlu1 %v520_v45 }
 0x16e   : > { %524 = vmax.xlane.f32.xlu1 %v523_v47 }
 0x1ef   : > { %v516_v48 = vpop.xlane.xlu0 %515 }
 0x1f0   : > { %v526_v49 = vsub.f32 %v370_v26, %v516_v48 }
 0x1f2   : > { %v530_v50 = vmul.f32 1.442695, %v526_v49 }
 0x1f3   : > { %v519_v51 = vpop.xlane.xlu0 %518 }
 0x1f4   : > { %1053 = vpow2.f32 %v530_v50  ;;  %v527_v52 = vsub.f32 %v416_v28, %v519_v51 }
 0x1f6   : > { %v532_v53 = vmul.f32 1.442695, %v527_v52 }
 0x1f7   : > { %v522_v54 = vpop.xlane.xlu1 %521 }
 0x1f8   : > { %1055 = vpow2.f32 %v532_v53  ;;  %v528_v55 = vsub.f32 %v462_v38, %v522_v54 }
 0x1fa   : > { %v534_v56 = vmul.f32 1.442695, %v528_v55 }
 0x1fb   : > { %v525_v57 = vpop.xlane.xlu1 %524 }
 0x1fc   : > { %1057 = vpow2.f32 %v534_v56  ;;  %v529_v58 = vsub.f32 %v508_v40, %v525_v57 }
 0x1fe   : > { %v1054_v59 = vpop.eup %1053  ;;  %v536_v60 = vmul.f32 1.442695, %v529_v58 }
 0x1ff   : > { %v538_v61 = vsel %vm513_vm5, %v1054_v59, 0.0 }
 0x200   : > { %1059 = vpow2.f32 %v536_v60  ;;  %539 = vadd.xlane.f32.xlu0 %v538_v61 }
 0x202   : > { %v1056_v62 = vpop.eup %1055 }
 0x203   : > { %v541_v63 = vsel %vm513_vm5, %v1056_v62, 0.0 }
 0x204   : > { %542 = vadd.xlane.f32.xlu1 %v541_v63 }
 0x206   : > { %v1058_v1 = vpop.eup %1057 }
 0x207   : > { %v544_v2 = vsel %vm513_vm5, %v1058_v1, 0.0 }
 0x208   : > { %545 = vadd.xlane.f32.xlu0 %v544_v2 }
 0x20a   : > { %v1060_v3 = vpop.eup %1059 }
 0x20b   : > { %v547_v4 = vsel %vm513_vm5, %v1060_v3, 0.0 }
 0x20c   : > { %548 = vadd.xlane.f32.xlu1 %v547_v4 }
 0x28d   : > { %v540_v13 = vpop.xlane.xlu0 %539 }
 0x28e   : > { %1061 = vrcp.f32 %v540_v13 }
 0x291   : > { %v543_v14 = vpop.xlane.xlu1 %542 }
 0x292   : > { %1063 = vrcp.f32 %v543_v14 }
 0x295   : > { %v546_v15 = vpop.xlane.xlu0 %545 }
 0x296   : > { %1065 = vrcp.f32 %v546_v15 }
 0x298   : > { %v1062_v16 = vpop.eup %1061 }
 0x299   : > { %v554_v17 = vmul.f32 %v1062_v16, %v1054_v59  ;;  %v549_v18 = vpop.xlane.xlu1 %548 }
 0x29a   : > { %1067 = vrcp.f32 %v549_v18 }
 0x29b   : > { %v558_v19 = vpack.c.bf16 %v554_v17, %v554_v17 }
 0x29c   : > { %v1064_v20 = vpop.eup %1063 }
 0x29d   : > { %v555_v21 = vmul.f32 %v1064_v20, %v1056_v62  ;;  %968 = vmatmul.mubr.msk.bf16.vlgmr.msra.gmra.mrb[8].mxu0 %vm513_vm5, %v558_v19 }
 0x29e   : > { %978 = vmatpush3.bf16.msra.mxu0 %v659_v10  ;;  %979 = vmatprep.mubr.msk.bf16.mxu0 %vm1250_vm0, %v1249_v0 }
 0x29f   : > { %v559_v22 = vpack.c.bf16 %v555_v21, %v555_v21 }
 0x2a0   : > { %v1066_v23 = vpop.eup %1065 }
 0x2a1   : > { %v556_v24 = vmul.f32 %v1066_v23, %v1058_v1  ;;  %974 = vmatmul.mubr.msk.bf16.vlgmr.msra.gmra.mrb[8].mxu1 %vm513_vm5, %v559_v22 }
 0x2a2   : > { %984 = vmatpush3.bf16.msra.mxu1 %v705_v12  ;;  %985 = vmatprep.mubr.msk.bf16.mxu1 %vm1250_vm0, %v1249_v0 }
 0x2a3   : > { %v560_v25 = vpack.c.bf16 %v556_v24, %v556_v24 }
 0x2a4   : > { %v1068_v26 = vpop.eup %1067 }
 0x2a5   : > { %v557_v27 = vmul.f32 %v1068_v26, %v1060_v3  ;;  %980 = vmatmul.mubr.msk.bf16.vlgmr.msra.gmra.mrb[12].mxu0 %vm513_vm5, %v560_v25 }
 0x2a7   : > { %v561_v28 = vpack.c.bf16 %v557_v27, %v557_v27 }
 0x2a9   : > { %986 = vmatmul.mubr.msk.bf16.vlgmr.msra.gmra.mrb[12].mxu1 %vm513_vm5, %v561_v28 }
 0x370   : > { %v603_v29 = vpop.f32.mrb[8].mxu0 }
 0x371   : > { %v969_v30 = vpop.f32.mrb[9].mxu0 }
 0x372   : > { %v606_v31 = vpop.f32.mrb[10].mxu0 }
 0x373   : > { %v970_v32 = vpop.f32.mrb[11].mxu0 }
 0x374   : > { %v649_v33 = vpop.f32.mrb[8].mxu1 }
 0x375   : > { %748 = vrot.lane.b32.xlu0 %v649_v33, %s1251_s19  ;;  %v975_v34 = vpop.f32.mrb[9].mxu1 }
 0x376   : > { %v652_v35 = vpop.f32.mrb[10].mxu1 }
 0x377   : > { %v976_v36 = vpop.f32.mrb[11].mxu1 }
 0x378   : > { %v695_v0 = vpop.f32.mrb[12].mxu0 }
 0x379   : > { %752 = vrot.lane.b32.xlu1 %v695_v0, %s1252_s9  ;;  %v981_v37 = vpop.f32.mrb[13].mxu0 }
 0x37a   : > { %v698_v38 = vpop.f32.mrb[14].mxu0 }
 0x37b   : > { %v982_v39 = vpop.f32.mrb[15].mxu0 }
 0x37c   : > { %v741_v40 = vpop.f32.mrb[12].mxu1 }
 0x37d   : > { %v987_v41 = vpop.f32.mrb[13].mxu1  ;;  %756 = vrot.lane.b32.xlu1 %v741_v40, %s1253_s22 }
 0x37e   : > { %v744_v42 = vpop.f32.mrb[14].mxu1 }
 0x37f   : > { %v988_v43 = vpop.f32.mrb[15].mxu1 }
 0x3e7   : > { %v749_v44 = vpop.permute.xlu0 %748 }
 0x3e8   : > { %v759_v46 = vsel %vm328_vm1, %v603_v29, %v749_v44 }
 0x3eb   : > { %v753_v45 = vpop.permute.xlu1 %752 }
 0x3ec   : > { %v761_v47 = vsel %vm760_vm7, %v759_v46, %v753_v45 }
 0x3ef   : > { %v757_v48 = vpop.permute.xlu1 %756 }
 0x3f0   : > { %v763_v49 = vsel %vm762_vm8, %v761_v47, %v757_v48 }
 0x3f1   : > { %v764_v50 = vpack.c.bf16 %v763_v49, %v763_v49 }
 0x3f3   : > { %765 = vst [vmem:[%s297_s1] sm:$0xf] %v764_v50 }
 0x3f4   : > { %1182 = shalt.err (!%p1179_p13)
}
 0x3f5   : > { %s1183_s27 = scalar_lea.hbm %s1568_s18, 64  ;;  %s1187_s7 = scalar_lea.hbm %s1617_s5, 128 }
 0x3f6   : > { %p1184_p0 = scmp.ne.s32.totalorder %s1568_s18, %s1183_s27  ;;  %p1188_p8 = scmp.lt.u32.totalorder %s1568_s18, %s1617_s5 }
 0x3f7   : > { %p1189_p5 = scmp.lt.u32.totalorder %s1187_s7, %s1183_s27  ;;  %p1191_p2 = scmp.lt.u32.totalorder %s1183_s27, %s1568_s18 }
 0x3f8   : > { %p1185_p7 = pnand %p1184_p0, %p1639_p10 }
 0x3f9   : > { %p1190_p4 = por %p1189_p5, %p1188_p8 }
 0x3fa   : > { %p1186_p6 = pneg %p1185_p7 }
 0x3fb   : > { %p1192_p9 = por %p1191_p2, %p1190_p4 }
 0x3fd   : > { %p1193_p12 = pnand %p1192_p9, %p1186_p6 }
 0x3ff   : > { %1196 = shalt.err (!%p1193_p12)
}
 0x400   : > { %995 = dma.vmem_to_hbm [thread:$0]  (%p1639_p10), %s1570_s24, 64, %s1568_s18, %s767_s2  }
 0x401 PF: > { %s792_s9 = sand.u32 1, %s1229_s28   ;;  %p1640_p1 = scmp.ne.s32.totalorder %s1628_s14, 0 }
 0x402   : > { %p1641_p3 = scmp.ge.s32.totalorder %s1241_s6, 2  ;;  %s793_s22 = scalar_lea.sflag [#allocation6], %s792_s9 }
 0x404   : > { %p1008_p11 = pnand %p1641_p3, %p1640_p1 }
 0x406   : > { %1224 = dma.done.wait (!%p1008_p11), %s793_s22, 64  }
 0x407   : > { %1226 = vsyncadd (!%p1008_p11), %s793_s22, 4294967232  ;;  %p25_p13 = scmp.ge.s32.totalorder %s1322_s8, 4   ;;  %s1642_s28 = smov %s1233_s29 }
 0x408   : > { %s1643_s29 = smov %s1237_s30  ;;  %s1644_s30 = smov %s1334_s11 }
 0x409   : > { %s1645_s6 = smov %s1322_s8  ;;  %27 = sbr.rel (!%p25_p13) target bundleno = 20 (0x14), region = 105 }
 0x410   :  { %798 = vsyncpa [#allocation5], 1 }
 0x411   :  { %800 = vsyncpa [#allocation5 + $0x1], 1 }
 0x412   :  { %801 = vsyncpa [#allocation8], 1 }
 0x413   :  { %803 = vsyncpa [#allocation8 + $0x1], 1 }
 0x414   :  { %804 = vsyncpa [#allocation6], 1 }
 0x415   :  { %806 = vsyncpa [#allocation6 + $0x1], 1 }

</bundles_post_ra>
